<compile_context>
chip_gen: v7x
topology: tpu7x:2x2x1
jax: 0.10.0
libtpu: 0.0.40
codegen_flags: <defaults>
</compile_context>

<pallas_src>
import jax
import jax.numpy as jnp
from jax.experimental import pallas as pl
from jax.experimental.pallas import tpu as pltpu


LANES = 128
# 4096 * 128 * 4 B = 2 MiB per f32 tile (1 MiB bf16); ~8 MiB pipelined VMEM.
MAX_BLOCK_ROWS = 4096
# Round block rows to a multiple of 32 sublanes (covers f32/bf16 packing).
ROW_ALIGN = 32


def _round_up(x, m):
    return (x + m - 1) // m * m


def _relpu2_kernel(a_ref, b_ref, x_ref, o_ref):
    # a_ref, b_ref: (1, 1) f32 scalars in SMEM.
    # x_ref, o_ref: (block_rows, 128) tiles in VMEM (native dtype).
    a = a_ref[0, 0]
    b = b_ref[0, 0]
    # Upcast in-register: HBM traffic stays in the native dtype, the
    # exp/log arithmetic runs in f32 (required on v5e, harmless elsewhere).
    x = x_ref[...].astype(jnp.float32)
    mask = x > 0.0
    # pow(x+1, b) = exp(b * log(x+1)); guard inactive branch so log stays finite.
    safe = jnp.where(mask, x + 1.0, 1.0)
    powed = jnp.exp(b * jnp.log(safe))
    active = x + a * powed - a
    o_ref[...] = jnp.where(mask, active, x).astype(o_ref.dtype)


def relpu2(x, weight_a, weight_b):
    """Apply Relpu2 elementwise to x. weight_a/weight_b are shape-(1,) params."""
    orig_shape = x.shape
    orig_dtype = x.dtype

    # Keep HBM traffic in the native dtype for the dtypes the kernel handles
    # natively; anything exotic falls back to f32 I/O.
    if orig_dtype in (jnp.float32, jnp.bfloat16):
        io_dtype = orig_dtype
    else:
        io_dtype = jnp.float32

    flat = x.reshape(-1).astype(io_dtype)
    n = flat.shape[0]

    # Pad only to a multiple of 128 lanes, and only when actually needed.
    n_lane = _round_up(n, LANES)
    padded = n_lane != n
    if padded:
        flat = jnp.pad(flat, (0, n_lane - n))
    rows = n_lane // LANES
    x2d = flat.reshape(rows, LANES)

    # Large lane-dense tile; partial last block (if any) is masked by Pallas.
    block_rows = min(MAX_BLOCK_ROWS, _round_up(rows, ROW_ALIGN))
    grid = (pl.cdiv(rows, block_rows),)

    a2d = weight_a.astype(jnp.float32).reshape(1, 1)
    b2d = weight_b.astype(jnp.float32).reshape(1, 1)

    out2d = pl.pallas_call(
        _relpu2_kernel,
        out_shape=jax.ShapeDtypeStruct((rows, LANES), io_dtype),
        grid_spec=pltpu.PrefetchScalarGridSpec(
            num_scalar_prefetch=0,
            grid=grid,
            in_specs=[
                pl.BlockSpec(memory_space=pltpu.SMEM),  # weight_a (1,1)
                pl.BlockSpec(memory_space=pltpu.SMEM),  # weight_b (1,1)
                pl.BlockSpec((block_rows, LANES), lambda i: (i, 0)),
            ],
            out_specs=pl.BlockSpec((block_rows, LANES), lambda i: (i, 0)),
        ),
        compiler_params=pltpu.CompilerParams(
            dimension_semantics=("parallel",),   # lets v7x shard across 2 TCs
            vmem_limit_bytes=32 << 20,           # covers v5e's 16 MiB default
        ),
    )(a2d, b2d, x2d)

    out = out2d.reshape(-1)
    if padded:
        out = out[:n]
    return out.reshape(orig_shape).astype(orig_dtype)


def _relpu2_ref(x, weight_a, weight_b):
    """Pure-JAX reference (computed in f32)."""
    xf = x.astype(jnp.float32)
    a = weight_a.astype(jnp.float32)[0]
    b = weight_b.astype(jnp.float32)[0]
    mask = xf > 0.0
    active = xf + a * jnp.power(jnp.where(mask, xf + 1.0, 1.0), b) - a
    return jnp.where(mask, active, xf)


if __name__ == "__main__":
    key = jax.random.PRNGKey(0)
    k_x, k_a, k_b, k_x2, k_x3 = jax.random.split(key, 5)

    # Deterministic synthetic parameters matching the PyTorch __init__ shapes:
    #   weight_a = 0.01 * randn(1)
    #   weight_b = 0.01 * randn(1) + 1
    weight_a = 0.01 * jax.random.normal(k_a, (1,), dtype=jnp.float32)
    weight_b = 0.01 * jax.random.normal(k_b, (1,), dtype=jnp.float32) + 1.0

    # --- Main test: small NCHW f32 feature map (128-divisible, no pad path) ---
    x = jax.random.normal(k_x, (2, 4, 16, 16), dtype=jnp.float32)
    out = jax.block_until_ready(relpu2(x, weight_a, weight_b))
    ref = _relpu2_ref(x, weight_a, weight_b)
    assert out.shape == x.shape and out.dtype == x.dtype
    assert jnp.allclose(out, ref, atol=1e-5, rtol=1e-5), "f32 mismatch vs reference"

    # --- Odd shape: exercises the pad-to-128 path and a partial last block ---
    x_odd = jax.random.normal(k_x2, (3, 5, 7, 11), dtype=jnp.float32)
    out_odd = jax.block_until_ready(relpu2(x_odd, weight_a, weight_b))
    ref_odd = _relpu2_ref(x_odd, weight_a, weight_b)
    assert out_odd.shape == x_odd.shape and out_odd.dtype == x_odd.dtype
    assert jnp.allclose(out_odd, ref_odd, atol=1e-5, rtol=1e-5), "odd-shape mismatch"

    # --- bf16 path: native-dtype HBM traffic, f32 compute in-register ---
    x_bf16 = jax.random.normal(k_x3, (2, 4, 16, 16), dtype=jnp.float32).astype(jnp.bfloat16)
    out_bf16 = jax.block_until_ready(relpu2(x_bf16, weight_a, weight_b))
    ref_bf16 = _relpu2_ref(x_bf16, weight_a, weight_b)
    assert out_bf16.shape == x_bf16.shape and out_bf16.dtype == jnp.bfloat16
    assert jnp.allclose(out_bf16.astype(jnp.float32), ref_bf16, atol=1e-2, rtol=1e-2), \
        "bf16 mismatch vs reference"

    print("KERNEL_OK")
</pallas_src>

<mosaic_0001>
module attributes {stable_mosaic.version = 11 : i64} {
  func.func @_relpu2_kernel(%arg0: i32, %arg1: memref<1x1xf32, #tpu.memory_space<smem>>, %arg2: memref<1x1xf32, #tpu.memory_space<smem>>, %arg3: memref<32x128xf32, #tpu.memory_space<vmem>>, %arg4: memref<32x128xf32, #tpu.memory_space<vmem>>) attributes {dimension_semantics = [#tpu.dimension_semantics<parallel>], iteration_bounds = array<i64: 1>, scalar_prefetch = 0 : i64, scratch_operands = 0 : i64, tpu.core_type = #tpu.core_type<tc>, window_params = [{transform_indices = @transform_0, window_bounds = array<i64: 1, 1>}, {transform_indices = @transform_1, window_bounds = array<i64: 1, 1>}, {transform_indices = @transform_2, window_bounds = array<i64: 32, 128>}, {transform_indices = @transform_3, window_bounds = array<i64: 32, 128>}]} {
    %c0 = arith.constant 0 : index
    %c0_0 = arith.constant 0 : index
    %0 = memref.load %arg1[%c0, %c0_0] : memref<1x1xf32, #tpu.memory_space<smem>>
    %c0_1 = arith.constant 0 : index
    %c0_2 = arith.constant 0 : index
    %1 = memref.load %arg2[%c0_1, %c0_2] : memref<1x1xf32, #tpu.memory_space<smem>>
    %c0_3 = arith.constant 0 : index
    %c0_4 = arith.constant 0 : index
    %2 = vector.load %arg3[%c0_3, %c0_4] : memref<32x128xf32, #tpu.memory_space<vmem>>, vector<32x128xf32>
    %cst = arith.constant 0.000000e+00 : f32
    %3 = vector.broadcast %cst : f32 to vector<32x128xf32>
    %4 = arith.cmpf ogt, %2, %3 : vector<32x128xf32>
    %cst_5 = arith.constant 1.000000e+00 : f32
    %5 = vector.broadcast %cst_5 : f32 to vector<32x128xf32>
    %6 = arith.addf %2, %5 : vector<32x128xf32>
    %cst_6 = arith.constant 1.000000e+00 : f32
    %7 = vector.broadcast %cst_6 : f32 to vector<32x128xf32>
    %8 = arith.select %4, %6, %7 : vector<32x128xi1>, vector<32x128xf32>
    %9 = math.log %8 : vector<32x128xf32>
    %10 = vector.broadcast %1 : f32 to vector<32x128xf32>
    %11 = arith.mulf %10, %9 : vector<32x128xf32>
    %12 = math.exp %11 : vector<32x128xf32>
    %13 = vector.broadcast %0 : f32 to vector<32x128xf32>
    %14 = arith.mulf %13, %12 : vector<32x128xf32>
    %15 = arith.addf %2, %14 : vector<32x128xf32>
    %16 = vector.broadcast %0 : f32 to vector<32x128xf32>
    %17 = arith.subf %15, %16 : vector<32x128xf32>
    %18 = arith.select %4, %17, %2 : vector<32x128xi1>, vector<32x128xf32>
    %c0_7 = arith.constant 0 : index
    %c0_8 = arith.constant 0 : index
    %19 = vector.load %arg4[%c0_7, %c0_8] : memref<32x128xf32, #tpu.memory_space<vmem>>, vector<32x128xf32>
    tpu.vector_store %arg4[%c0_7, %c0_8], %18 {strides = array<i32>} : memref<32x128xf32, #tpu.memory_space<vmem>>, vector<32x128xf32>,
    return
  }
  func.func @transform_0(%arg0: i32) -> (i32, i32) {
    %c0_i32 = arith.constant 0 : i32
    %c0_i32_0 = arith.constant 0 : i32
    %c0_i32_1 = arith.constant 0 : i32
    return %c0_i32, %c0_i32_0 : i32, i32
  }
  func.func @transform_1(%arg0: i32) -> (i32, i32) {
    %c0_i32 = arith.constant 0 : i32
    %c0_i32_0 = arith.constant 0 : i32
    %c0_i32_1 = arith.constant 0 : i32
    return %c0_i32, %c0_i32_0 : i32, i32
  }
  func.func @transform_2(%arg0: i32) -> (i32, i32) {
    %c0_i32 = arith.constant 0 : i32
    %c0_i32_0 = arith.constant 0 : i32
    return %arg0, %c0_i32 : i32, i32
  }
  func.func @transform_3(%arg0: i32) -> (i32, i32) {
    %c0_i32 = arith.constant 0 : i32
    %c0_i32_0 = arith.constant 0 : i32
    return %arg0, %c0_i32 : i32, i32
  }
}

</mosaic_0001>

<bundles_post_ra>
// kernel: tpu_custom_call.1
= control target key start
LH: loop header
LB: loop body
LE: loop exit
PB: predicated region body
PF: predicated region fallthrough
CT: control target
= control target key end

     0   :  { %10 = vsyncpa [#allocation5], 0  ;;  %s244_s0 = inlined_call_operand.<no memory space> [shape: f32[1,1], index: 0, kind: input, shape index: {}]   ;;  %s245_s1 = inlined_call_operand.<no memory space> [shape: f32[1,1], index: 1, kind: input, shape index: {}]   ;;  %s246_s2 = inlined_call_operand.hbm [shape: f32[16,128], index: 2, kind: input, shape index: {}]   ;;  %s247_s3 = inlined_call_operand.hbm [shape: f32[16,128], index: 3, kind: output, shape index: {}]  }
   0x1   :  { %11 = vsyncpa [#allocation6], 0 }
   0x2   :  { %20 = vsyncadd [#allocation5], 256  ;;  %s176_s12 = smov [#allocation4]   ;;  %s128_s16 = scalar_lea.hbm %s246_s2, 256 }
   0x3   :  { %s21_s13 = sshll.u32 %s176_s12, 4  ;;  %p129_p0 = scmp.ne.s32.totalorder %s246_s2, %s128_s16  ;;  %s22_s13 = int_to_ptr.vmem [resolvable:$true] %s21_s13 }
   0x4   :  { %p132_p1 = scmp.lt.u32.totalorder %s128_s16, %s246_s2 }
   0x6   :  { %p134_p2 = pnand %p132_p1, %p129_p0 }
   0x8   :  { %137 = shalt.err (!%p134_p2)
}
   0x9   :  { %s138_s21 = scalar_lea.vmem %s22_s13, 256  ;;  %s142_s22 = scalar_lea.vmem %s22_s13, 512 }
   0xa   :  { %p139_p3 = scmp.ne.s32.totalorder %s22_s13, %s138_s21  ;;  %p143_p4 = scmp.lt.s32.totalorder %s22_s13, %s22_s13 }
   0xb   :  { %p144_p5 = scmp.lt.s32.totalorder %s142_s22, %s138_s21 }
   0xd   :  { %p145_p6 = por %p144_p5, %p143_p4 }
   0xf   :  { %p146_p7 = pnand %p145_p6, %p139_p3 }
  0x11   :  { %149 = shalt.err (!%p146_p7)
}
  0x12   :  { %s177_s23 = smov 128   ;;  %s178_s24 = smov 8  }
  0x13   :  { %27 = dma.hbm_to_vmem [thread:$0]  %s246_s2, 256, %s22_s13, [#allocation5], %s177_s23, %s177_s23, %s178_s24  }
  0x14   :  { %172 = dma.done.wait [#allocation5], 512  }
  0x15   :  { %173 = vsyncadd [#allocation5], 4294966784  ;;  %v33_v0 = vld [vmem:[#allocation4] sm:$0xff]  ;;  %v34_v1 = vld [vmem:[#allocation4 + $0x8] sm:$0xff]  ;;  %v57_v13 = vstv %s245_s1  ;;  %v70_v29 = vstv %s244_s0 }
  0x16   :  { %v35_v2 = vld [vmem:[#allocation4 + $0x10] sm:$0xff]  ;;  %vm37_vm0 = vcmp.gt.f32.partialorder %v33_v0, 0.0  ;;  %v41_v3 = vadd.f32 1.0, %v33_v0  ;;  %vm38_vm1 = vcmp.gt.f32.partialorder %v34_v1, 0.0  ;;  %v42_v4 = vadd.f32 1.0, %v34_v1  ;;  %v36_v5 = vld [vmem:[#allocation4 + $0x18] sm:$0xff] }
  0x17   :  { %vm39_vm2 = vcmp.gt.f32.partialorder %v35_v2, 0.0  ;;  %v43_v6 = vadd.f32 1.0, %v35_v2  ;;  %vm40_vm3 = vcmp.gt.f32.partialorder %v36_v5, 0.0  ;;  %v44_v7 = vadd.f32 1.0, %v36_v5 }
  0x18   :  { %v45_v8 = vsel %vm37_vm0, %v41_v3, 1.0  ;;  %v46_v9 = vsel %vm38_vm1, %v42_v4, 1.0 }
  0x19   :  { %112 = vlog2.f32 %v45_v8  ;;  %v47_v10 = vsel %vm39_vm2, %v43_v6, 1.0  ;;  %v48_v11 = vsel %vm40_vm3, %v44_v7, 1.0 }
  0x1a   :  { %114 = vlog2.f32 %v46_v9 }
  0x1b   :  { %116 = vlog2.f32 %v47_v10 }
  0x1c   :  { %118 = vlog2.f32 %v48_v11 }
  0x23   :  { %v113_v12 = vpop.eup %112 }
  0x24   :  { %v115_v14 = vpop.eup %114  ;;  %v50_v15 = vmul.f32 0.6931472, %v113_v12 }
  0x25   :  { %v117_v16 = vpop.eup %116  ;;  %v52_v17 = vmul.f32 0.6931472, %v115_v14 }
  0x26   :  { %v119_v18 = vpop.eup %118  ;;  %v58_v19 = vmul.f32 %v57_v13, %v50_v15  ;;  %v54_v20 = vmul.f32 0.6931472, %v117_v16 }
  0x27   :  { %v59_v21 = vmul.f32 %v57_v13, %v52_v17  ;;  %v56_v22 = vmul.f32 0.6931472, %v119_v18 }
  0x28   :  { %v62_v23 = vmul.f32 1.442695, %v58_v19  ;;  %v60_v24 = vmul.f32 %v57_v13, %v54_v20 }
  0x29   :  { %v64_v25 = vmul.f32 1.442695, %v59_v21  ;;  %v61_v26 = vmul.f32 %v57_v13, %v56_v22 }
  0x2a   :  { %120 = vpow2.f32 %v62_v23  ;;  %v66_v27 = vmul.f32 1.442695, %v60_v24 }
  0x2b   :  { %122 = vpow2.f32 %v64_v25  ;;  %v68_v28 = vmul.f32 1.442695, %v61_v26 }
  0x2c   :  { %124 = vpow2.f32 %v66_v27 }
  0x2d   :  { %126 = vpow2.f32 %v68_v28 }
  0x34   :  { %v121_v30 = vpop.eup %120 }
  0x35   :  { %v123_v31 = vpop.eup %122  ;;  %v71_v32 = vmul.f32 %v121_v30, %v70_v29 }
  0x36   :  { %v125_v33 = vpop.eup %124  ;;  %v72_v34 = vmul.f32 %v123_v31, %v70_v29 }
  0x37   :  { %v127_v35 = vpop.eup %126  ;;  %v75_v36 = vadd.f32 %v71_v32, %v33_v0  ;;  %v73_v37 = vmul.f32 %v125_v33, %v70_v29 }
  0x38   :  { %v76_v38 = vadd.f32 %v72_v34, %v34_v1  ;;  %v74_v39 = vmul.f32 %v127_v35, %v70_v29 }
  0x39   :  { %v79_v40 = vsub.f32 %v75_v36, %v70_v29  ;;  %v77_v41 = vadd.f32 %v73_v37, %v35_v2 }
  0x3a   :  { %v80_v42 = vsub.f32 %v76_v38, %v70_v29  ;;  %v78_v43 = vadd.f32 %v74_v39, %v36_v5 }
  0x3b   :  { %v83_v44 = vsel %vm37_vm0, %v79_v40, %v33_v0  ;;  %v81_v45 = vsub.f32 %v77_v41, %v70_v29 }
  0x3c   :  { %87 = vst [vmem:[#allocation7] sm:$0xff] %v83_v44  ;;  %v84_v46 = vsel %vm38_vm1, %v80_v42, %v34_v1  ;;  %v82_v47 = vsub.f32 %v78_v43, %v70_v29 }
  0x3d   :  { %88 = vst [vmem:[#allocation7 + $0x8] sm:$0xff] %v84_v46  ;;  %v85_v48 = vsel %vm39_vm2, %v81_v45, %v35_v2 }
  0x3e   :  { %89 = vst [vmem:[#allocation7 + $0x10] sm:$0xff] %v85_v48  ;;  %v86_v49 = vsel %vm40_vm3, %v82_v47, %v36_v5 }
  0x3f   :  { %90 = vst [vmem:[#allocation7 + $0x18] sm:$0xff] %v86_v49 }
  0x40   :  { %95 = vsyncadd [#allocation6], 256  ;;  %s179_s0 = smov [#allocation7]  }
  0x41   :  { %s96_s29 = sshll.u32 %s179_s0, 4  ;;  %s97_s29 = int_to_ptr.vmem [resolvable:$true] %s96_s29 }
  0x42   :  { %s150_s30 = scalar_lea.vmem %s97_s29, 256  ;;  %s154_s4 = scalar_lea.vmem %s97_s29, 512 }
  0x43   :  { %p151_p8 = scmp.ne.s32.totalorder %s97_s29, %s150_s30  ;;  %p155_p9 = scmp.lt.s32.totalorder %s97_s29, %s97_s29 }
  0x44   :  { %p156_p10 = scmp.lt.s32.totalorder %s154_s4, %s150_s30 }
  0x46   :  { %p157_p11 = por %p156_p10, %p155_p9 }
  0x48   :  { %p158_p12 = pnand %p157_p11, %p151_p8 }
  0x4a   :  { %161 = shalt.err (!%p158_p12)
}
  0x4b   :  { %s162_s7 = scalar_lea.hbm %s247_s3, 256 }
  0x4c   :  { %p163_p13 = scmp.ne.s32.totalorder %s247_s3, %s162_s7  ;;  %p166_p0 = scmp.lt.u32.totalorder %s162_s7, %s247_s3 }
  0x4e   :  { %p168_p1 = pnand %p166_p0, %p163_p13 }
  0x50   :  { %171 = shalt.err (!%p168_p1)
}
  0x51   :  { %102 = dma.vmem_to_hbm [thread:$0]  %s97_s29, 256, %s247_s3, [#allocation6], %s177_s23, %s177_s23, %s178_s24  }
  0x52   :  { %174 = dma.done.wait [#allocation6], 512  }
  0x53   :  { %175 = vsyncadd [#allocation6], 4294966784 }
  0x54   :  { %106 = vsyncpa [#allocation5], 1 }
  0x55   :  { %107 = vsyncpa [#allocation6], 1 }

</bundles_post_ra>
